<compile_context>
chip_gen: v5e
topology: v5e:2x2
jax: 0.10.0
libtpu: 0.0.40
codegen_flags: <defaults>
</compile_context>

<pallas_src>
import math

import jax
import jax.numpy as jnp
from jax.experimental import pallas as pl
from jax.experimental.pallas import tpu as pltpu

_LANE = 128     # lane width: last dim of VMEM tiles is padded to this
_SUBLANE = 8    # sublane granularity for row tiles


def _round_up(v, m):
    return (v + m - 1) // m * m


def _embed_kernel(x_ref, w_ref, bias_ref, o_ref):
    # y = x @ W_blk + (bias + modality_emb)  -> one MXU matmul + one VPU add.
    acc = jnp.dot(x_ref[...], w_ref[...], preferred_element_type=jnp.float32)
    o_ref[...] = (acc + bias_ref[...]).astype(o_ref.dtype)


def universal_patch_embedder_forward(x, modality, patch_size,
                                     weights, biases, modality_embeddings,
                                     *, block_m=8192, compute_dtype=None):
    """Forward pass of UniversalPatchEmbedder.

    x:          (B, patch_size*patch_size, d_in)
    modality:   static python int
    weights[i]: (input_dims[i], D_out)   (== PyTorch Linear weight.T)
    biases[i]:  (D_out,)
    modality_embeddings: (num_modalities, D_out)
    compute_dtype: optionally jnp.bfloat16 to halve the x/W HBM streams
                   (recommended on v5e); accumulation stays float32.
    """
    out_dtype = x.dtype
    B = x.shape[0]
    d_in = x.shape[-1]
    M = B * patch_size * patch_size

    w = weights[modality]                                      # (d_in, D_out)
    D_out = w.shape[1]
    # Fuse Linear bias + modality embedding into a single broadcast vector
    # (one DMA stream / one VPU add instead of two).
    bias_comb = (biases[modality].astype(jnp.float32)
                 + modality_embeddings[modality].astype(jnp.float32))

    # --- R-fold block-diagonal lane packing ---------------------------------
    # Smallest R with (R*D_out) % 128 == 0.  Then
    #   (M, d_in) @ W  ==  ((M/R, R*d_in) @ block_diag(W x R)).reshape(M, D_out)
    # with identical row-major bytes -> lane-dense output, no padding/slice.
    R = _LANE // math.gcd(D_out, _LANE)
    if M % R != 0 or R > 32:
        # Fallback: emit (M, D_out) directly and accept masked partial stores,
        # which is still far cheaper than pad-to-128 write amplification.
        R = 1
    M_rows = M // R
    K_p = R * d_in
    N_p = R * D_out

    x2 = x.reshape(M_rows, K_p)           # free: row-major view, no copy
    if R > 1:
        w_p = jnp.kron(jnp.eye(R, dtype=w.dtype), w)   # (R*d_in, R*D_out) blk-diag
        bias_p = jnp.tile(bias_comb, R)
    else:
        w_p = w
        bias_p = bias_comb
    bias_p = bias_p.reshape(1, N_p)

    if compute_dtype is not None:
        x2 = x2.astype(compute_dtype)
        w_p = w_p.astype(compute_dtype)

    in_itemsize = jnp.dtype(x2.dtype).itemsize
    out_itemsize = jnp.dtype(out_dtype).itemsize

    # --- row tile size (packed rows per grid step) ---------------------------
    blk_m = _round_up(max(_SUBLANE, min(block_m, M_rows)), _SUBLANE)
    # Keep >= 2 grid steps whenever there is enough work so the "parallel"
    # row axis can shard across the 2 TensorCores on v7x (no-op on v5e/v6e).
    if M_rows > _SUBLANE:
        blk_m = min(blk_m, _round_up(pl.cdiv(M_rows, 2), _SUBLANE))

    # Real (lane/sublane padded) VMEM footprints.
    per_row_bytes = 2 * (_round_up(K_p, _LANE) * in_itemsize          # x, double-buffered
                         + _round_up(N_p, _LANE) * out_itemsize)      # out, double-buffered
    resident_bytes = 2 * (_round_up(K_p, _SUBLANE) * _round_up(N_p, _LANE) * in_itemsize
                          + _SUBLANE * _round_up(N_p, _LANE) * 4)     # W_blk + bias
    vmem_budget = 32 * 2**20               # safe on v7x's 64 MiB physical VMEM
    max_rows = max(_SUBLANE,
                   ((vmem_budget - resident_bytes) // per_row_bytes)
                   // _SUBLANE * _SUBLANE)
    blk_m = min(blk_m, max_rows)
    grid_m = pl.cdiv(M_rows, blk_m)        # ragged last block handled by Pallas

    total_vmem = blk_m * per_row_bytes + resident_bytes
    vmem_limit = int(min(48 * 2**20, max(16 * 2**20, total_vmem + (2 << 20))))

    cost = pl.CostEstimate(
        flops=2 * M_rows * K_p * N_p,
        transcendentals=0,
        bytes_accessed=(M * d_in * in_itemsize + K_p * N_p * in_itemsize
                        + N_p * 4 + M * D_out * out_itemsize),
    )

    out_packed = pl.pallas_call(
        _embed_kernel,
        out_shape=jax.ShapeDtypeStruct((M_rows, N_p), out_dtype),
        grid=(grid_m,),
        in_specs=[
            pl.BlockSpec((blk_m, K_p), lambda i: (i, 0)),   # x tile (pipelined)
            pl.BlockSpec((K_p, N_p), lambda i: (0, 0)),     # W_blk resident
            pl.BlockSpec((1, N_p), lambda i: (0, 0)),       # fused bias resident
        ],
        out_specs=pl.BlockSpec((blk_m, N_p), lambda i: (i, 0)),
        compiler_params=pltpu.CompilerParams(
            dimension_semantics=("parallel",),   # rows shard across TCs on v7x
            vmem_limit_bytes=vmem_limit,
        ),
        cost_estimate=cost,
    )(x2, w_p, bias_p)

    # (M/R, R*D_out) is byte-identical to row-major (M, D_out): reshape is free.
    return out_packed.reshape(B, patch_size, patch_size, D_out)


if __name__ == "__main__":
    # Module config (small, consistent with __init__ signature)
    B = 2
    patch_size = 4
    output_dim = 32
    input_dims = (6, 10)
    num_modalities = len(input_dims)

    key = jax.random.PRNGKey(0)
    k_x0, k_x1, k_w, k_b, k_e = jax.random.split(key, 5)

    # Deterministic synthetic parameters (shapes from __init__):
    #   nn.Linear(dim, output_dim) -> weight (output_dim, dim), stored transposed here
    #   nn.Embedding(len(input_dims), output_dim)
    weights = [
        0.02 * jax.random.normal(jax.random.fold_in(k_w, i), (d, output_dim), jnp.float32)
        for i, d in enumerate(input_dims)
    ]
    biases = [
        0.02 * jax.random.normal(jax.random.fold_in(k_b, i), (output_dim,), jnp.float32)
        for i, _ in enumerate(input_dims)
    ]
    modality_embeddings = 0.02 * jax.random.normal(
        k_e, (num_modalities, output_dim), jnp.float32)

    ok = True
    for modality, k_x in ((0, k_x0), (1, k_x1)):
        d_in = input_dims[modality]
        # Input laid out as 'b (p1 p2) d' per the rearrange pattern in the module.
        x = jax.random.normal(k_x, (B, patch_size * patch_size, d_in), jnp.float32)

        out = universal_patch_embedder_forward(
            x, modality, patch_size, weights, biases, modality_embeddings)
        out = jax.block_until_ready(out)

        # Pure-JAX reference check
        x4 = x.reshape(B, patch_size, patch_size, d_in)
        ref = (x4 @ weights[modality]
               + biases[modality]
               + modality_embeddings[modality])
        ok &= out.shape == (B, patch_size, patch_size, output_dim)
        ok &= bool(jnp.allclose(out, ref, atol=1e-5, rtol=1e-5))

    assert ok, "mismatch vs reference"
    print("KERNEL_OK")
</pallas_src>

<mosaic_0001>
module attributes {stable_mosaic.version = 11 : i64} {
  func.func @_embed_kernel(%arg0: i32, %arg1: memref<8x24xf32, #tpu.memory_space<vmem>>, %arg2: memref<24x128xf32, #tpu.memory_space<vmem>>, %arg3: memref<1x128xf32, #tpu.memory_space<vmem>>, %arg4: memref<8x128xf32, #tpu.memory_space<vmem>>) attributes {dimension_semantics = [#tpu.dimension_semantics<parallel>], iteration_bounds = array<i64: 1>, scalar_prefetch = 0 : i64, scratch_operands = 0 : i64, tpu.core_type = #tpu.core_type<tc>, window_params = [{transform_indices = @transform_0, window_bounds = array<i64: 8, 24>}, {pipeline_mode = #tpu.pipeline_mode<synchronous>, transform_indices = @transform_1, window_bounds = array<i64: 24, 128>}, {pipeline_mode = #tpu.pipeline_mode<synchronous>, transform_indices = @transform_2, window_bounds = array<i64: 1, 128>}, {transform_indices = @transform_3, window_bounds = array<i64: 8, 128>}]} {
    %c0 = arith.constant 0 : index
    %c0_0 = arith.constant 0 : index
    %0 = vector.load %arg1[%c0, %c0_0] : memref<8x24xf32, #tpu.memory_space<vmem>>, vector<8x24xf32>
    %c0_1 = arith.constant 0 : index
    %c0_2 = arith.constant 0 : index
    %1 = vector.load %arg2[%c0_1, %c0_2] : memref<24x128xf32, #tpu.memory_space<vmem>>, vector<24x128xf32>
    %cst = arith.constant dense<0.000000e+00> : vector<8x128xf32>
    %2 = tpu.matmul %0, %1, %cst {dimension_numbers = #tpu.dot_dimension_numbers<[1], [0], [0], [1], [0, 0, 1, 1], [], []>} : vector<8x24xf32>, vector<24x128xf32>, vector<8x128xf32> -> vector<8x128xf32>
    %c0_3 = arith.constant 0 : index
    %c0_4 = arith.constant 0 : index
    %3 = vector.load %arg3[%c0_3, %c0_4] : memref<1x128xf32, #tpu.memory_space<vmem>>, vector<1x128xf32>
    %4 = vector.broadcast %3 : vector<1x128xf32> to vector<8x128xf32>
    %5 = arith.addf %2, %4 : vector<8x128xf32>
    %c0_5 = arith.constant 0 : index
    %c0_6 = arith.constant 0 : index
    %6 = vector.load %arg4[%c0_5, %c0_6] : memref<8x128xf32, #tpu.memory_space<vmem>>, vector<8x128xf32>
    tpu.vector_store %arg4[%c0_5, %c0_6], %5 {strides = array<i32>} : memref<8x128xf32, #tpu.memory_space<vmem>>, vector<8x128xf32>,
    return
  }
  func.func @transform_0(%arg0: i32) -> (i32, i32) {
    %c0_i32 = arith.constant 0 : i32
    %c0_i32_0 = arith.constant 0 : i32
    return %arg0, %c0_i32 : i32, i32
  }
  func.func @transform_1(%arg0: i32) -> (i32, i32) {
    %c0_i32 = arith.constant 0 : i32
    %c0_i32_0 = arith.constant 0 : i32
    %c0_i32_1 = arith.constant 0 : i32
    return %c0_i32, %c0_i32_0 : i32, i32
  }
  func.func @transform_2(%arg0: i32) -> (i32, i32) {
    %c0_i32 = arith.constant 0 : i32
    %c0_i32_0 = arith.constant 0 : i32
    %c0_i32_1 = arith.constant 0 : i32
    return %c0_i32, %c0_i32_0 : i32, i32
  }
  func.func @transform_3(%arg0: i32) -> (i32, i32) {
    %c0_i32 = arith.constant 0 : i32
    %c0_i32_0 = arith.constant 0 : i32
    return %arg0, %c0_i32 : i32, i32
  }
}

</mosaic_0001>

<bundles_post_ra>
// kernel: tpu_custom_call.1
= control target key start
LH: loop header
LB: loop body
LE: loop exit
PB: predicated region body
PF: predicated region fallthrough
CT: control target
= control target key end

     0   :  { %8 = vsyncpa [#allocation3], 0  ;;  %s218_s0 = inlined_call_operand.hbm [shape: f32[8,24], index: 0, kind: input, shape index: {}]   ;;  %s219_s1 = inlined_call_operand.hbm [shape: f32[24,128], index: 1, kind: input, shape index: {}]   ;;  %s220_s2 = inlined_call_operand.vmem [shape: f32[1,128], index: 2, kind: input, shape index: {}]   ;;  %s221_s3 = inlined_call_operand.hbm [shape: f32[8,128], index: 3, kind: output, shape index: {}]  }
   0x1   :  { %9 = vsyncpa [#allocation6], 0 }
   0x2   :  { %10 = vsyncpa [#allocation4], 0  ;;  %s16_s14 = sshll.u32 %s218_s0, 4  ;;  %s181_s15 = smov [#allocation2]   ;;  %s17_s14 = int_to_ptr.hbm [resolvable:$true] %s16_s14 }
   0x3   :  { %s18_s16 = sshll.u32 %s181_s15, 4  ;;  %s26_s19 = sshll.u32 %s219_s1, 4  ;;  %s19_s16 = int_to_ptr.vmem [resolvable:$true] %s18_s16  ;;  %s27_s19 = int_to_ptr.hbm [resolvable:$true] %s26_s19 }
   0x4   :  { %21 = dma.hbm_to_vmem [thread:$0]  %s17_s14, 128, %s19_s16, [#allocation3]  }
   0x5   :  { %s182_s20 = smov [#allocation5]   ;;  %s183_s22 = smov 128  }
   0x6   :  { %s28_s21 = sshll.u32 %s182_s20, 4  ;;  %s184_s23 = smov 8   ;;  %s29_s21 = int_to_ptr.vmem [resolvable:$true] %s28_s21 }
   0x7   :  { %34 = dma.hbm_to_vmem [thread:$0]  %s27_s19, 384, %s29_s21, [#allocation6], %s183_s22, %s183_s22, %s184_s23  }
   0x8   :  { %175 = dma.done.wait [#allocation3], 128  }
   0x9   :  { %176 = vsyncadd [#allocation3], 4294967168 }
   0xa   :  { %177 = dma.done.wait [#allocation6], 384  }
   0xb   :  { %178 = vsyncadd [#allocation6], 4294966912  ;;  %v48_v0 = vld [vmem:[#allocation5 + $0x10] sm:$0xff]  ;;  %v47_v1 = vld [vmem:[#allocation5 + $0x8] sm:$0xff]  ;;  %vm53_vm0 = vcmask 195584   ;;  %s185_s24 = smov [#allocation7]  }
   0xc   :  { %70 = vmatpush.msra.mxu0 %v48_v0  ;;  %v46_v2 = vld [vmem:[#allocation5] sm:$0xff]  ;;  %v45_v3 = vld [vmem:[#allocation2] sm:$0xff]  ;;  %s83_s25 = sshll.u32 %s185_s24, 4  ;;  %s85_s28 = sshll.u32 %s221_s3, 4  ;;  %s84_s25 = int_to_ptr.vmem [resolvable:$true] %s83_s25  ;;  %s86_s28 = int_to_ptr.hbm [resolvable:$true] %s85_s28 }
   0xd   :  { %v102_v4 = vld [vmem:[%s220_s2] ss:$0 sm:$0xff] }
   0xe   :  { %71 = vmatpush.msra.mxu0 %v47_v1 }
  0x10   :  { %72 = vmatpush.msra.mxu0 %v46_v2 }
  0x11   :  { %96 = vmatmul.msk.f32.vlgmr.msra.gmra.mxu0 %vm53_vm0, %v45_v3 }
  0x8e   :  { %v74_v5 = vpop.f32.mrf.mxu0 }
  0x8f   :  { %v75_v6 = vadd.f32 %v102_v4, %v74_v5 }
  0x91   :  { %77 = vst [vmem:[#allocation7] sm:$0xff] %v75_v6 }
  0x92   :  { %88 = dma.vmem_to_hbm [thread:$0]  %s84_s25, 128, %s86_s28, [#allocation4]  }
  0x93   :  { %179 = dma.done.wait [#allocation4], 128  }
  0x94   :  { %180 = vsyncadd [#allocation4], 4294967168 }
  0x95   :  { %93 = vsyncpa [#allocation3], 1 }
  0x96   :  { %94 = vsyncpa [#allocation6], 1 }
  0x97   :  { %95 = vsyncpa [#allocation4], 1 }

</bundles_post_ra>
